<compile_context>
chip_gen: v6e
topology: v6e:2x2x1
jax: 0.10.0
libtpu: 0.0.40
codegen_flags: <defaults>
</compile_context>

<pallas_src>
import jax
import jax.numpy as jnp
from jax.experimental import pallas as pl
from jax.experimental.pallas import tpu as pltpu


def _round_up(x, m):
    return ((x + m - 1) // m) * m


def _vmem_capacity_bytes():
    """Physical VMEM of the attached TPU; conservative (v7x) fallback."""
    try:
        info = pltpu.get_tpu_info()
        cap = getattr(info, "vmem_capacity_bytes", None)
        if cap:
            return int(cap)
    except Exception:
        pass
    return 64 * 1024 * 1024


def _make_focal_kernel(batch, tile_rows, alpha, gamma):
    """Build the kernel with static batch size / tile / alpha / gamma baked in."""
    g = float(gamma)
    int_gamma = int(g) if (g == int(g) and 0.0 <= g <= 8.0) else None

    def kernel(logits_ref, targets_ref, out_ref):
        i = pl.program_id(0)

        logits = logits_ref[...].astype(jnp.float32)   # (TB, C), cast in-kernel
        targets = targets_ref[...]                     # (TB, 1) int32

        # Numerically stable log-sum-exp over the class (lane) axis.
        m = jnp.max(logits, axis=1, keepdims=True)
        lse = jnp.log(jnp.sum(jnp.exp(logits - m), axis=1, keepdims=True)) + m

        # Target logit via one-hot select (classes live on lanes); single
        # where + sum, no bool->f32 cast or extra multiply.
        col = jax.lax.broadcasted_iota(jnp.int32, logits.shape, 1)
        tgt_logit = jnp.sum(jnp.where(col == targets, logits, 0.0),
                            axis=1, keepdims=True)

        ce = lse - tgt_logit                           # (TB, 1) per-row CE
        pt = jnp.exp(-ce)
        w = jnp.maximum(1.0 - pt, 0.0)                 # guard tiny negatives
        if int_gamma is not None:                      # integer gamma -> plain muls (VPU)
            fw = jnp.ones_like(w)
            for _ in range(int_gamma):
                fw = fw * w
        else:
            fw = jnp.power(w, jnp.float32(g))
        focal = jnp.float32(alpha) * fw * ce           # (TB, 1)

        # Mask rows beyond the true batch (partial last block delivers
        # unspecified tail data; where() keeps it out of the sum).
        row = jax.lax.broadcasted_iota(jnp.int32, focal.shape, 0) + i * tile_rows
        focal = jnp.where(row < batch, focal, 0.0)

        # Per-tile partial sum into this step's own lane-dense 128-wide slot.
        partial = jnp.sum(focal)
        lane = jax.lax.broadcasted_iota(jnp.int32, (1, 128), 1)
        out_ref[...] = jnp.where(lane == 0, partial, 0.0)

    return kernel


def focal_loss(logits, targets, alpha=1.0, gamma=2.0, tb=None):
    """logits: [B, C] float (any float dtype); targets: [B] int class ids."""
    B, C = logits.shape
    itemsize = jnp.dtype(logits.dtype).itemsize

    vmem_cap = _vmem_capacity_bytes()
    # Double-buffered logits budget: ~8 MiB on 64 MiB parts (v7x),
    # ~16 MiB on 128 MiB parts (v5e/v6e).
    budget = max(8 * 1024 * 1024, vmem_cap // 8)

    if tb is None:
        tb = budget // max(1, 2 * C * itemsize)
        tb = max(8, min(int(tb), 32768))
    tb = int(tb)

    # Keep the block inside the array: multiple of 8 rows and <= B (so only the
    # trailing edge block is partial), or the exact batch when B < 8.
    if B < 8:
        tb = B
    else:
        tb = max(8, (min(tb, B) // 8) * 8)

    grid_n = pl.cdiv(B, tb)
    targets2d = targets.reshape(B, 1).astype(jnp.int32)

    kernel = _make_focal_kernel(B, tb, alpha, gamma)

    cost = pl.CostEstimate(
        flops=7 * B * C,                               # sub/mul/add per element
        transcendentals=B * C + 2 * B,                 # exp per element + exp/log per row
        bytes_accessed=B * C * itemsize + B * 4 + grid_n * 128 * 4,
    )

    # Scoped VMEM: ~64 MiB on 128 MiB parts, ~32 MiB on v7x's 64 MiB.
    vmem_limit = int(max(32 * 1024 * 1024, vmem_cap // 2))

    partials = pl.pallas_call(
        kernel,
        out_shape=jax.ShapeDtypeStruct((1, grid_n * 128), jnp.float32),
        grid_spec=pltpu.PrefetchScalarGridSpec(
            num_scalar_prefetch=0,
            grid=(grid_n,),
            in_specs=[
                pl.BlockSpec((tb, C), lambda i: (i, 0)),   # logits tile, native dtype
                pl.BlockSpec((tb, 1), lambda i: (i, 0)),   # targets tile (int32)
            ],
            # One lane-dense 128-wide slot per grid step -> fully parallel grid.
            out_specs=pl.BlockSpec((1, 128), lambda i: (0, i)),
        ),
        compiler_params=pltpu.CompilerParams(
            dimension_semantics=("parallel",),             # shards across TCs on v7x
            vmem_limit_bytes=vmem_limit,
        ),
        cost_estimate=cost,
    )(logits, targets2d)

    # Final reduce of per-tile partials + mean in the wrapper (tiny array).
    return jnp.sum(partials) / jnp.float32(B)


def _reference(logits, targets, alpha=1.0, gamma=2.0):
    logp = jax.nn.log_softmax(logits.astype(jnp.float32), axis=-1)
    ce = -jnp.take_along_axis(logp, targets[:, None].astype(jnp.int32), axis=-1)[:, 0]
    pt = jnp.exp(-ce)
    return jnp.mean(alpha * (1.0 - pt) ** gamma * ce)


if __name__ == "__main__":
    key = jax.random.PRNGKey(0)
    k1, k2 = jax.random.split(key)
    B, C = 13, 32  # odd batch exercises the partial (masked) last tile
    logits = jax.random.normal(k1, (B, C), dtype=jnp.float32)
    targets = jax.random.randint(k2, (B,), 0, C, dtype=jnp.int32)

    # tb=8 forces a 2-step grid: per-tile partials + partial last block path.
    loss = focal_loss(logits, targets, alpha=1.0, gamma=2.0, tb=8)
    jax.block_until_ready(loss)
    ref = _reference(logits, targets, alpha=1.0, gamma=2.0)
    assert jnp.allclose(loss, ref, atol=1e-5, rtol=1e-5), (loss, ref)

    # Also exercise the auto-sized tile path (single block covering the batch).
    loss2 = focal_loss(logits, targets, alpha=0.25, gamma=2.0)
    jax.block_until_ready(loss2)
    ref2 = _reference(logits, targets, alpha=0.25, gamma=2.0)
    assert jnp.allclose(loss2, ref2, atol=1e-5, rtol=1e-5), (loss2, ref2)

    print("KERNEL_OK")
</pallas_src>

<mosaic_0001>
module attributes {stable_mosaic.version = 11 : i64} {
  func.func @kernel(%arg0: i32, %arg1: memref<8x32xf32, #tpu.memory_space<vmem>>, %arg2: memref<8x1xi32, #tpu.memory_space<vmem>>, %arg3: memref<1x128xf32, #tpu.memory_space<vmem>>) attributes {dimension_semantics = [#tpu.dimension_semantics<parallel>], iteration_bounds = array<i64: 2>, scalar_prefetch = 0 : i64, scratch_operands = 0 : i64, tpu.core_type = #tpu.core_type<tc>, window_params = [{transform_indices = @transform_0, window_bounds = array<i64: 8, 32>}, {transform_indices = @transform_1, window_bounds = array<i64: 8, 1>}, {transform_indices = @transform_2, window_bounds = array<i64: 1, 128>}]} {
    %c0 = arith.constant 0 : index
    %c0_0 = arith.constant 0 : index
    %0 = vector.load %arg1[%c0, %c0_0] : memref<8x32xf32, #tpu.memory_space<vmem>>, vector<8x32xf32>
    %c0_1 = arith.constant 0 : index
    %c0_2 = arith.constant 0 : index
    %1 = vector.load %arg2[%c0_1, %c0_2] : memref<8x1xi32, #tpu.memory_space<vmem>>, vector<8x1xi32>
    %cst = arith.constant dense<0xFF800000> : vector<8xf32>
    %2 = vector.multi_reduction <maximumf>, %0, %cst [1] : vector<8x32xf32> to vector<8xf32>
    %3 = vector.shape_cast %2 : vector<8xf32> to vector<8x1xf32>
    %4 = vector.broadcast %3 : vector<8x1xf32> to vector<8x32xf32>
    %5 = arith.subf %0, %4 : vector<8x32xf32>
    %6 = math.exp %5 : vector<8x32xf32>
    %cst_3 = arith.constant dense<0.000000e+00> : vector<8xf32>
    %7 = vector.multi_reduction <add>, %6, %cst_3 [1] : vector<8x32xf32> to vector<8xf32>
    %8 = vector.shape_cast %7 : vector<8xf32> to vector<8x1xf32>
    %9 = math.log %8 : vector<8x1xf32>
    %10 = arith.addf %9, %3 : vector<8x1xf32>
    %11 = tpu.iota {dimensions = array<i32: 1>} : vector<8x32xi32>
    %12 = vector.broadcast %1 : vector<8x1xi32> to vector<8x32xi32>
    %13 = arith.cmpi eq, %11, %12 : vector<8x32xi32>
    %cst_4 = arith.constant 0.000000e+00 : f32
    %14 = vector.broadcast %cst_4 : f32 to vector<8x32xf32>
    %15 = arith.select %13, %0, %14 : vector<8x32xi1>, vector<8x32xf32>
    %cst_5 = arith.constant dense<0.000000e+00> : vector<8xf32>
    %16 = vector.multi_reduction <add>, %15, %cst_5 [1] : vector<8x32xf32> to vector<8xf32>
    %17 = vector.shape_cast %16 : vector<8xf32> to vector<8x1xf32>
    %18 = arith.subf %10, %17 : vector<8x1xf32>
    %cst_6 = arith.constant 0.000000e+00 : f32
    %19 = vector.broadcast %cst_6 : f32 to vector<8x1xf32>
    %20 = arith.subf %19, %18 : vector<8x1xf32>
    %21 = math.exp %20 : vector<8x1xf32>
    %cst_7 = arith.constant 1.000000e+00 : f32
    %22 = vector.broadcast %cst_7 : f32 to vector<8x1xf32>
    %23 = arith.subf %22, %21 : vector<8x1xf32>
    %cst_8 = arith.constant 0.000000e+00 : f32
    %24 = vector.broadcast %cst_8 : f32 to vector<8x1xf32>
    %25 = arith.maximumf %23, %24 : vector<8x1xf32>
    %cst_9 = arith.constant 1.000000e+00 : f32
    %26 = vector.broadcast %cst_9 : f32 to vector<8x1xf32>
    %27 = arith.mulf %26, %25 : vector<8x1xf32>
    %28 = arith.mulf %27, %25 : vector<8x1xf32>
    %cst_10 = arith.constant 1.000000e+00 : f32
    %29 = vector.broadcast %cst_10 : f32 to vector<8x1xf32>
    %30 = arith.mulf %29, %28 : vector<8x1xf32>
    %31 = arith.mulf %30, %18 : vector<8x1xf32>
    %32 = tpu.iota {dimensions = array<i32: 0>} : vector<8x1xi32>
    %c8_i32 = arith.constant 8 : i32
    %33 = arith.muli %arg0, %c8_i32 : i32
    %34 = vector.broadcast %33 : i32 to vector<8x1xi32>
    %35 = arith.addi %32, %34 : vector<8x1xi32>
    %c13_i32 = arith.constant 13 : i32
    %36 = vector.broadcast %c13_i32 : i32 to vector<8x1xi32>
    %37 = arith.cmpi slt, %35, %36 : vector<8x1xi32>
    %cst_11 = arith.constant 0.000000e+00 : f32
    %38 = vector.broadcast %cst_11 : f32 to vector<8x1xf32>
    %39 = arith.select %37, %31, %38 : vector<8x1xi1>, vector<8x1xf32>
    %40 = vector.shape_cast %39 : vector<8x1xf32> to vector<1x8x1xf32>
    %cst_12 = arith.constant dense<0.000000e+00> : vector<1xf32>
    %41 = vector.multi_reduction <add>, %40, %cst_12 [1, 2] : vector<1x8x1xf32> to vector<1xf32>
    %42 = vector.shape_cast %41 : vector<1xf32> to vector<1x1x1xf32>
    %43 = vector.extract %42[0, 0, 0] : f32 from vector<1x1x1xf32>
    %44 = tpu.iota {dimensions = array<i32: 1>} : vector<1x128xi32>
    %c0_i32 = arith.constant 0 : i32
    %45 = vector.broadcast %c0_i32 : i32 to vector<1x128xi32>
    %46 = arith.cmpi eq, %44, %45 : vector<1x128xi32>
    %cst_13 = arith.constant 0.000000e+00 : f32
    %47 = vector.broadcast %43 : f32 to vector<1x128xf32>
    %48 = vector.broadcast %cst_13 : f32 to vector<1x128xf32>
    %49 = arith.select %46, %47, %48 : vector<1x128xi1>, vector<1x128xf32>
    %c0_14 = arith.constant 0 : index
    %c0_15 = arith.constant 0 : index
    %50 = vector.load %arg3[%c0_14, %c0_15] : memref<1x128xf32, #tpu.memory_space<vmem>>, vector<1x128xf32>
    tpu.vector_store %arg3[%c0_14, %c0_15], %49 {strides = array<i32>} : memref<1x128xf32, #tpu.memory_space<vmem>>, vector<1x128xf32>,
    return
  }
  func.func @transform_0(%arg0: i32) -> (i32, i32) {
    %c0_i32 = arith.constant 0 : i32
    %c0_i32_0 = arith.constant 0 : i32
    return %arg0, %c0_i32 : i32, i32
  }
  func.func @transform_1(%arg0: i32) -> (i32, i32) {
    %c0_i32 = arith.constant 0 : i32
    %c0_i32_0 = arith.constant 0 : i32
    return %arg0, %c0_i32 : i32, i32
  }
  func.func @transform_2(%arg0: i32) -> (i32, i32) {
    %c0_i32 = arith.constant 0 : i32
    %c0_i32_0 = arith.constant 0 : i32
    return %c0_i32, %arg0 : i32, i32
  }
}

</mosaic_0001>

<bundles_post_ra>
// kernel: tpu_custom_call.1
= control target key start
LH: loop header
LB: loop body
LE: loop exit
PB: predicated region body
PF: predicated region fallthrough
CT: control target
= control target key end

     0   :  { %7 = vsyncpa [#allocation3], 0  ;;  %s528_s0 = inlined_call_operand.vmem [shape: f32[13,32], index: 0, kind: input, shape index: {}]   ;;  %s529_s1 = inlined_call_operand.vmem [shape: s32[13,1], index: 1, kind: input, shape index: {}]   ;;  %s530_s2 = inlined_call_operand.hbm [shape: f32[1,256], index: 2, kind: output, shape index: {}]  }
   0x1   :  { %9 = vsyncpa [#allocation3 + $0x1], 0  ;;  %s428_s9 = smov 0   ;;  %s430_s10 = smov 0  }
   0x2   :  { %s432_s11 = smov 0   ;;  %s434_s12 = smov 0  }
   0x3 LB: > { %s449_s13 = sadd.s32 4294967295, %s409_s12   ;;  %s290_s14 = sadd.s32 4294967294, %s409_s12   ;;  %s409_s12 = sphi %s434_s12, %s536_s12   ;;  %s405_s11 = sphi %s432_s11, %s535_s11   ;;  %s401_s10 = sphi %s430_s10, %s534_s10   ;;  %s397_s9 = sphi %s428_s9, %s533_s9  }
   0x4   : > { %s453_s15 = sadd.s32 1, %s409_s12   ;;  %s74_s16 = sadd.s32 1, %s405_s11 }
   0x5   : > { %s71_s17 = ssub.s32 %s409_s12, %s453_s15  ;;  %p84_p0 = scmp.ne.s32.totalorder %s405_s11, %s401_s10 }
   0x6   : > { %p72_p1 = scmp.eq.s32.totalorder %s71_s17, 0  ;;  %p85_p2 = scmp.eq.s32.totalorder %s449_s13, 1 }
   0x7   : > { %p90_p3 = scmp.ne.s32.totalorder %s401_s10, %s397_s9  ;;  %p91_p4 = scmp.eq.s32.totalorder %s290_s14, 1 }
   0x8   : > { %s464_s18 = scalar_select %p72_p1, %s405_s11, %s74_s16  }
   0x9   : > { %p466_p5 = por %p85_p2, %p84_p0  ;;  %p470_p6 = por %p91_p4, %p90_p3 }
   0xa   : > { %p293_p7 = scmp.ge.s32.totalorder %s409_s12, 1  ;;  %p123_p8 = scmp.lt.s32.totalorder %s409_s12, 3 }
   0xc   : > { %p124_p9 = pnand %p293_p7, %p123_p8 }
   0xd   : > { %p147_p10 = scmp.lt.s32.totalorder (!%p124_p9), %s449_s13, 1  ;;  %s296_s29 = sshll.u32 (!%p124_p9), %s449_s13, 3 }
   0xe   : > { %127 = sbr.rel (%p124_p9) target bundleno = 583 (0x247), region = 28  ;;  %s145_s30 = sand.u32 (!%p124_p9), 1, %s401_s10  }
   0xf   : > { %s297_s3 = sshll.u32 (!%p124_p9), %s449_s13, 4  ;;  %s146_s4 = scalar_lea.vmem (!%p124_p9), [#allocation2], %s145_s30 }
  0x10   : > { %s223_s5 = sshll.u32 (!%p124_p9), %s146_s4, 4  ;;  %s493_s14 = scalar_lea.hbm (!%p124_p9), %s530_s2, %s297_s3  ;;  %s224_s5 = int_to_ptr.vmem [resolvable:$true] %s223_s5 }
  0x11   : > { %s211_s16 = scalar_lea.sflag (!%p124_p9), [#allocation3], %s145_s30  ;;  %s349_s17 = scalar_lea.vmem (!%p124_p9), %s224_s5, 16 }
  0x12   : > { %p350_p11 = scmp.ne.s32.totalorder (!%p124_p9), %s224_s5, %s349_s17 }
  0x13   : > { %v411_v0 = vmov 0   ;;  %s148_s21 = scalar_select %p147_p10, %s449_s13, 1  ;;  %vm157_vm0 = vcmask 261120   ;;  %v170_v7 = vlaneseq  ;;  %v191_v23 = vstv %s296_s29 }
  0x14   : > { %342 = vset.pattern.permute.xlu0 %v411_v0  ;;  %vm195_vm3 = vcmask 7168   ;;  %p351_p12 = pnand %p350_p11, %p466_p5  ;;  %s412_s13 = smov [#allocation2]  }
  0x15   : > { %s294_s22 = sshll.u32 %s148_s21, 3  ;;  %v171_v8 = vand.u32 127, %v170_v7  ;;  %v189_v22 = vshrl.u32 %v170_v7, 7  ;;  %s353_s21 = sshll.u32 %s412_s13, 4  ;;  %s354_s21 = int_to_ptr.vmem [resolvable:$false] %s353_s21 }
  0x16   : > { %s150_s25 = scalar_lea.vmem %s528_s0, %s294_s22  ;;  %s154_s28 = scalar_lea.vmem %s529_s1, %s294_s22 }
  0x17   : > { %v155_v1 = vld [vmem:[%s150_s25] sm:$0xff]  ;;  %v192_v26 = vadd.s32 %v191_v23, %v189_v22  ;;  %vm206_vm4 = vcmp.eq.s32.totalorder %v171_v8, 0  ;;  %p352_p13 = pneg %p351_p12  ;;  %s355_s22 = scalar_lea.vmem %s354_s21, 32 }
  0x18   : > { %v158_v2 = vsel %vm157_vm0, %v155_v1, -inf  ;;  %v156_v3 = vld [vmem:[%s154_s28] sm:$0xff]  ;;  %p356_p0 = scmp.lt.s32.totalorder %s224_s5, %s354_s21  ;;  %p357_p1 = scmp.lt.s32.totalorder %s355_s22, %s349_s17 }
  0x19   : > { %159 = vmax.xlane.f32.xlu0 %v158_v2  ;;  %vm193_vm2 = vcmp.lt.s32.totalorder %v192_v26, 13 }
  0x1a   : > { %p358_p2 = por %p357_p1, %p356_p0 }
  0x1c   : > { %p359_p3 = pnand %p358_p2, %p352_p13 }
  0x2f   : > { %173 = vperm.xlu0 %342, %v156_v3  }
  0xa2   : > { %v160_v4 = vpop.xlane.xlu0 %159 }
  0xa3   : > { %v161_v5 = vsub.f32 %v155_v1, %v160_v4 }
  0xa5   : > { %v162_v6 = vmul.f32 1.442695, %v161_v5 }
  0xa7   : > { %343 = vpow2.f32 %v162_v6 }
  0xaa   : > { %v174_v9 = vpop.permute.xlu0 %173 }
  0xab   : > { %vm175_vm1 = vcmp.eq.s32.totalorder %v171_v8, %v174_v9 }
  0xac   : > { %v176_v11 = vsel %vm175_vm1, %v155_v1, 0.0 }
  0xad   : > { %v177_v13 = vsel %vm157_vm0, %v176_v11, 0.0 }
  0xb4   : > { %v344_v10 = vpop.eup %343 }
  0xb5   : > { %v164_v12 = vsel %vm157_vm0, %v344_v10, 0.0 }
  0xb6   : > { %165 = vadd.xlane.f32.xlu1 %v164_v12 }
  0xba   : > { %178 = vadd.xlane.f32.xlu1 %v177_v13 }
 0x13f   : > { %v166_v14 = vpop.xlane.xlu1 %165 }
 0x140   : > { %345 = vlog2.f32 %v166_v14 }
 0x143   : > { %v179_v17 = vpop.xlane.xlu1 %178 }
 0x14d   : > { %v346_v15 = vpop.eup %345 }
 0x14e   : > { %v168_v16 = vmul.f32 0.6931472, %v346_v15 }
 0x150   : > { %v169_v18 = vadd.f32 %v168_v16, %v160_v4 }
 0x152   : > { %v180_v19 = vsub.f32 %v169_v18, %v179_v17 }
 0x154   : > { %v181_v20 = vsub.f32 0.0, %v180_v19 }
 0x156   : > { %v182_v21 = vmul.f32 1.442695, %v181_v20 }
 0x158   : > { %347 = vpow2.f32 %v182_v21 }
 0x165   : > { %v348_v24 = vpop.eup %347 }
 0x166   : > { %v184_v25 = vsub.f32 1.0, %v348_v24 }
 0x168   : > { %v185_v27 = vmax.f32 %v184_v25, 0.0 }
 0x16a   : > { %v186_v28 = vmul.f32 %v185_v27, %v185_v27 }
 0x16c   : > { %v187_v29 = vmul.f32 %v186_v28, %v180_v19 }
 0x16e   : > { %v194_v30 = vsel %vm193_vm2, %v187_v29, 0.0 }
 0x16f   : > { %v196_v31 = vsel %vm195_vm3, %v194_v30, 0.0 }
 0x170   : > { %197 = vadd.xlane.f32.xlu1 %v196_v31 }
 0x1f9   : > { %v198_v32 = vpop.xlane.xlu1 %197 }
 0x1fa   : > { %v199_v33 = vrot.slane %v198_v32, 4 }
 0x1fc   : > { %v200_v34 = vadd.f32 %v199_v33, %v198_v32 }
 0x1fe   : > { %v201_v35 = vrot.slane %v200_v34, 2 }
 0x200   : > { %v202_v36 = vadd.f32 %v201_v35, %v200_v34 }
 0x202   : > { %v203_v37 = vrot.slane %v202_v36, 1 }
 0x204   : > { %v204_v38 = vadd.f32 %v203_v37, %v202_v36 }
 0x206   : > { %300 = vpush %v204_v38 }
 0x237   : > { %s301_s6 = spop %300 }
 0x238   : > { %v207_v39 = vstv %s301_s6 }
 0x239   : > { %v208_v40 = vsel %vm206_vm4, %v207_v39, 0.0 }
 0x23a   : > { %209 = vst [vmem:[%s146_s4] sm:$0x1] %v208_v40 }
 0x23b   : > { %362 = shalt.err (!%p359_p3)
}
 0x23c   : > { %s363_s23 = scalar_lea.hbm %s493_s14, 16  ;;  %s367_s26 = scalar_lea.hbm %s530_s2, 32 }
 0x23d   : > { %p364_p4 = scmp.ne.s32.totalorder %s493_s14, %s363_s23  ;;  %p368_p9 = scmp.lt.s32.totalorder %s493_s14, %s530_s2 }
 0x23e   : > { %p369_p10 = scmp.lt.s32.totalorder %s367_s26, %s363_s23 }
 0x23f   : > { %p365_p7 = pnand %p364_p4, %p466_p5 }
 0x240   : > { %p370_p11 = por %p369_p10, %p368_p9 }
 0x241   : > { %p366_p8 = pneg %p365_p7 }
 0x243   : > { %p371_p12 = pnand %p370_p11, %p366_p8 }
 0x245   : > { %374 = shalt.err (!%p371_p12)
}
 0x246   : > { %302 = dma.vmem_to_hbm [thread:$0]  (%p466_p5), %s224_s5, 16, %s493_s14, %s211_s16  }
 0x247 PF: > { %p308_p13 = scmp.ge.s32.totalorder %s409_s12, 2  ;;  %s235_s29 = sand.u32 1, %s397_s9  }
 0x248   : > { %s236_s30 = scalar_lea.sflag [#allocation3], %s235_s29 }
 0x249   : > { %p305_p0 = pnand %p308_p13, %p470_p6 }
 0x24b   : > { %p306_p1 = pneg %p305_p0 }
 0x24d   : > { %392 = dma.done.wait (%p306_p1), %s236_s30, 16  }
 0x24e   : > { %394 = vsyncadd (%p306_p1), %s236_s30, 4294967280  ;;  %p12_p2 = scmp.ge.s32.totalorder %s453_s15, 4   ;;  %s533_s9 = smov %s401_s10 }
 0x24f   : > { %s534_s10 = smov %s405_s11  ;;  %s535_s11 = smov %s464_s18 }
 0x250   : > { %s536_s12 = smov %s453_s15  ;;  %14 = sbr.rel (!%p12_p2) target bundleno = 3 (0x3), region = 66 }
 0x255   :  { %240 = vsyncpa [#allocation3], 1 }
 0x256   :  { %242 = vsyncpa [#allocation3 + $0x1], 1 }

</bundles_post_ra>
